<compile_context>
chip_gen: v6e
topology: v6e:2x2x1
jax: 0.10.0
libtpu: 0.0.40
codegen_flags: <defaults>
</compile_context>

<pallas_src>
import functools

import jax
import jax.numpy as jnp
from jax.experimental import pallas as pl
from jax.experimental.pallas import tpu as pltpu

_OUT6 = 6
_OUT2 = 1
_FUSED = 8          # 6 + 1, padded up to 8 output lanes
_LANE = 128         # TPU lane width (last-dim tiling / padding unit)
_SUBLANE = 8        # TPU sublane width (second-minor tiling unit)


def _round_up(n, m):
    return ((n + m - 1) // m) * m


_VMEM_CAP = None


def _vmem_capacity_bytes():
    """Per-core VMEM capacity; conservative 64 MiB (v7x per-TC) if the query fails."""
    global _VMEM_CAP
    if _VMEM_CAP is None:
        cap = 64 * 1024 * 1024
        try:
            queried = int(pltpu.get_tpu_info().vmem_capacity_bytes)
            if queried > 0:
                cap = queried
        except Exception:
            pass
        _VMEM_CAP = cap
    return _VMEM_CAP


def _plan_tiles(batch, d, itemsize, force_ktile=False):
    """Pick block_m / block_k and a footprint-derived vmem_limit (generation-aware)."""
    cap = _vmem_capacity_bytes()
    budget = (cap * 5) // 8            # ~40 MiB on v7x (64 MiB VMEM), ~80 MiB on v5e/v6e
    b_pad = _round_up(batch, _SUBLANE)
    slack = 1 << 16

    def limit(used):
        # Actual footprint + 25% + 2 MiB headroom, floored at 16 MiB, clamped to physical.
        return int(min(cap, max(used + used // 4 + (2 << 20), 16 << 20)))

    if not force_ktile:
        # ---- preferred path: whole reduction dim per tile (block_k == D) ----
        per_row = 2 * d * itemsize + 2 * _LANE * itemsize      # x (dbl-buf) + out (dbl-buf, lane-padded)
        fixed = d * _LANE * 4 + _SUBLANE * _LANE * 4 + slack   # weight (1 buf, lane-padded) + bias
        avail = budget - fixed
        if avail >= _SUBLANE * per_row:
            bm_max = min(b_pad, max(_SUBLANE,
                                    (avail // per_row) // _SUBLANE * _SUBLANE))
            # Bytes-based tile target: ~6 MiB of x per grid step amortizes the
            # ~0.35 us per-step overhead (512-1024-wide f32 tiles ~85% of roofline).
            bm_target = _round_up(max(1, (6 << 20) // max(1, d * itemsize)), _SUBLANE)
            bm = min(bm_max, bm_target)
            # v7x: keep >=4 grid steps so both TensorCores stream x, as long as
            # that does not shrink each x tile below ~1 MiB.
            bm_quarter = _round_up(-(-b_pad // 4), _SUBLANE)
            if bm_quarter * d * itemsize >= (1 << 20):
                bm = min(bm, bm_quarter)
            bm = int(max(_SUBLANE, min(bm, b_pad)))
            used = 2 * bm * d * itemsize + 2 * bm * _LANE * itemsize + fixed
            return dict(ktiled=False, block_m=bm, block_k=int(d),
                        vmem_limit=limit(used))

    # ---- fallback for very large D (or forced in tests): split the reduction axis ----
    bm = int(min(b_pad, 256))
    per_bk = 2 * bm * itemsize + 2 * _LANE * 4                 # x (dbl-buf) + weight (dbl-buf, lane-padded)
    fixed = 2 * bm * _LANE * itemsize + bm * _LANE * 4 + slack  # out (dbl-buf, lane-padded) + f32 acc
    bk = max(_LANE, ((budget - fixed) // per_bk) // _LANE * _LANE)
    bk = int(min(bk, _round_up(d, _LANE)))
    if force_ktile:
        bk = _LANE                                             # exercise multi-step reduction in tests
    used = 2 * bm * bk * itemsize + 2 * bk * _LANE * 4 + fixed
    return dict(ktiled=True, block_m=bm, block_k=bk, vmem_limit=limit(used))


def _sepfc_kernel(x_ref, w_ref, b_ref, out_ref):
    """One batch tile: single fused (block_m, D) @ (D, 8) MXU pass for both heads."""
    acc = jnp.dot(x_ref[...], w_ref[...], preferred_element_type=jnp.float32)
    out_ref[...] = (acc + b_ref[...].astype(jnp.float32)).astype(out_ref.dtype)


def _sepfc_ktiled_kernel(x_ref, w_ref, b_ref, out_ref, acc_ref, *, d_total, block_k):
    """Large-D fallback: accumulate partial (block_m, 8) products over the K grid axis."""
    k = pl.program_id(1)

    @pl.when(k == 0)
    def _():
        acc_ref[...] = jnp.zeros_like(acc_ref)

    x = x_ref[...]
    # The last K tile may read past D (ragged column tail): zero those columns so
    # garbage (incl. NaN) never reaches the accumulator.  The weight is zero-padded
    # to a multiple of block_k host-side, so its blocks never read out of bounds.
    col = jax.lax.broadcasted_iota(jnp.int32, x.shape, 1) + k * block_k
    x = jnp.where(col < d_total, x, jnp.zeros_like(x))
    acc_ref[...] += jnp.dot(x, w_ref[...], preferred_element_type=jnp.float32)

    @pl.when(k == pl.num_programs(1) - 1)
    def _():
        out_ref[...] = (acc_ref[...] + b_ref[...].astype(jnp.float32)).astype(out_ref.dtype)


@functools.partial(jax.jit, static_argnames=("force_ktile",))
def _sepalate_fc_impl(x, w_fused, b_fused, *, force_ktile=False):
    """Returns the fused (B, 8) output: cols 0..5 = fc_6 head, col 6 = fc_2 head."""
    B, D = x.shape
    plan = _plan_tiles(B, D, x.dtype.itemsize, force_ktile=force_ktile)
    bm, bk = plan["block_m"], plan["block_k"]

    if not plan["ktiled"]:
        return pl.pallas_call(
            _sepfc_kernel,
            out_shape=jax.ShapeDtypeStruct((B, _FUSED), x.dtype),
            grid=(pl.cdiv(B, bm),),
            in_specs=[
                # x is streamed (double-buffered); ragged batch tail is masked.
                pl.BlockSpec((bm, D), lambda i: (i, 0)),
                # Weight/bias index maps are constant: single-buffer them so the
                # lane-padded (D, 128) weight block is only resident once.
                pl.BlockSpec((D, _FUSED), lambda i: (0, 0),
                             pipeline_mode=pl.Buffered(1)),
                pl.BlockSpec((1, _FUSED), lambda i: (0, 0),
                             pipeline_mode=pl.Buffered(1)),
            ],
            out_specs=pl.BlockSpec((bm, _FUSED), lambda i: (i, 0)),
            compiler_params=pltpu.CompilerParams(
                dimension_semantics=("parallel",),      # shards batch across v7x's 2 TCs
                vmem_limit_bytes=plan["vmem_limit"],
            ),
        )(x, w_fused, b_fused)

    # Large-D fallback: K (reduction) grid axis with an f32 scratch accumulator.
    d_pad = _round_up(D, bk)
    if d_pad != D:
        w_fused = jnp.concatenate(
            [w_fused, jnp.zeros((d_pad - D, _FUSED), w_fused.dtype)], axis=0)
    kernel = functools.partial(_sepfc_ktiled_kernel, d_total=D, block_k=bk)
    return pl.pallas_call(
        kernel,
        out_shape=jax.ShapeDtypeStruct((B, _FUSED), x.dtype),
        grid=(pl.cdiv(B, bm), d_pad // bk),
        in_specs=[
            pl.BlockSpec((bm, bk), lambda i, k: (i, k)),
            pl.BlockSpec((bk, _FUSED), lambda i, k: (k, 0)),
            pl.BlockSpec((1, _FUSED), lambda i, k: (0, 0),
                         pipeline_mode=pl.Buffered(1)),
        ],
        out_specs=pl.BlockSpec((bm, _FUSED), lambda i, k: (i, 0)),
        scratch_shapes=[pltpu.VMEM((bm, _FUSED), jnp.float32)],
        compiler_params=pltpu.CompilerParams(
            dimension_semantics=("parallel", "arbitrary"),
            vmem_limit_bytes=plan["vmem_limit"],
        ),
    )(x, w_fused, b_fused)


def fuse_params(w6_t, b6, w2_t, b2, compute_dtype=None):
    """Fuse both heads into one (D, 8) weight and one (1, 8) f32 bias.

    Call once and reuse the result (hoists the fusion out of the per-call path).
    torch stores Linear weights as (out, in); pass the transposes (in, out) here.
    """
    dtype = jnp.dtype(compute_dtype) if compute_dtype is not None else w6_t.dtype
    d = w6_t.shape[0]
    pad = _FUSED - _OUT6 - _OUT2
    w_fused = jnp.concatenate(
        [w6_t.astype(dtype), w2_t.astype(dtype), jnp.zeros((d, pad), dtype)], axis=1)
    b_fused = jnp.concatenate(
        [b6.astype(jnp.float32), b2.astype(jnp.float32),
         jnp.zeros((pad,), jnp.float32)])[None, :]
    return w_fused, b_fused


def sepalate_fc(x, w6_t, b6, w2_t, b2, *, compute_dtype=None, _force_ktile=False):
    """Pallas SepalateFc.forward: (out_6, out_2) = (x @ W6^T + b6, x @ W2^T + b2).

    compute_dtype: optionally jnp.bfloat16 to halve HBM reads of x (the kernel is
      HBM-read-bound); MXU accumulation stays f32.  Default keeps exact f32 math.
    NOTE: the two column slices below cost one extra tiny (B, 8) pass; callers that
      can consume the fused (B, 8) buffer directly should use _sepalate_fc_impl.
    """
    w_fused, b_fused = fuse_params(w6_t, b6, w2_t, b2, compute_dtype)
    if compute_dtype is not None:
        x = x.astype(compute_dtype)
    out = _sepalate_fc_impl(x, w_fused, b_fused, force_ktile=_force_ktile)
    return out[:, :_OUT6], out[:, _OUT6:_OUT6 + _OUT2]


def init_params(key, input_size):
    """Deterministic init matching torch.nn.Linear shapes (uniform +-1/sqrt(in))."""
    k1, k2, k3, k4 = jax.random.split(key, 4)
    bound = 1.0 / jnp.sqrt(jnp.float32(input_size))
    # torch weight shape is (out, in); we store the transpose (in, out).
    w6_t = jax.random.uniform(k1, (input_size, 6), jnp.float32, -bound, bound)
    b6 = jax.random.uniform(k2, (6,), jnp.float32, -bound, bound)
    w2_t = jax.random.uniform(k3, (input_size, 1), jnp.float32, -bound, bound)
    b2 = jax.random.uniform(k4, (1,), jnp.float32, -bound, bound)
    return w6_t, b6, w2_t, b2


if __name__ == "__main__":
    key = jax.random.PRNGKey(0)
    k_x, k_p, k_x2, k_x3 = jax.random.split(key, 4)

    batch, input_size = 8, 32
    x = jax.random.normal(k_x, (batch, input_size), jnp.float32)
    w6_t, b6, w2_t, b2 = init_params(k_p, input_size)

    out6, out2 = sepalate_fc(x, w6_t, b6, w2_t, b2)
    jax.block_until_ready((out6, out2))

    # Reference check against plain JAX (same math as the torch module).
    ref6 = x @ w6_t + b6
    ref2 = x @ w2_t + b2
    assert out6.shape == (batch, 6) and out2.shape == (batch, 1)
    assert jnp.allclose(out6, ref6, atol=1e-5, rtol=1e-5)
    assert jnp.allclose(out2, ref2, atol=1e-5, rtol=1e-5)

    # Ragged batch (13 rows): exercises the masked tail block on the batch axis.
    x2 = jax.random.normal(k_x2, (13, input_size), jnp.float32)
    t6, t2 = sepalate_fc(x2, w6_t, b6, w2_t, b2)
    jax.block_until_ready((t6, t2))
    assert t6.shape == (13, 6) and t2.shape == (13, 1)
    assert jnp.allclose(t6, x2 @ w6_t + b6, atol=1e-5, rtol=1e-5)
    assert jnp.allclose(t2, x2 @ w2_t + b2, atol=1e-5, rtol=1e-5)

    # Large-D fallback path (K/reduction grid axis + f32 scratch accumulator),
    # forced at a small D that is not a multiple of 128 so the masked ragged
    # K-tail and the multi-step accumulation are both exercised.
    d_big = 192
    xk = jax.random.normal(k_x3, (13, d_big), jnp.float32)
    w6k, b6k, w2k, b2k = init_params(jax.random.PRNGKey(1), d_big)
    f6, f2 = sepalate_fc(xk, w6k, b6k, w2k, b2k, _force_ktile=True)
    jax.block_until_ready((f6, f2))
    assert f6.shape == (13, 6) and f2.shape == (13, 1)
    assert jnp.allclose(f6, xk @ w6k + b6k, atol=1e-4, rtol=1e-5)
    assert jnp.allclose(f2, xk @ w2k + b2k, atol=1e-4, rtol=1e-5)

    print("KERNEL_OK")
</pallas_src>

<mosaic_0001>
module attributes {stable_mosaic.version = 11 : i64} {
  func.func @_sepfc_kernel(%arg0: i32, %arg1: memref<8x32xf32, #tpu.memory_space<vmem>>, %arg2: memref<32x8xf32, #tpu.memory_space<vmem>>, %arg3: memref<1x8xf32, #tpu.memory_space<vmem>>, %arg4: memref<8x8xf32, #tpu.memory_space<vmem>>) attributes {dimension_semantics = [#tpu.dimension_semantics<parallel>], iteration_bounds = array<i64: 1>, scalar_prefetch = 0 : i64, scratch_operands = 0 : i64, tpu.core_type = #tpu.core_type<tc>, window_params = [{transform_indices = @transform_0, window_bounds = array<i64: 8, 32>}, {pipeline_mode = #tpu.pipeline_mode<synchronous>, transform_indices = @transform_1, window_bounds = array<i64: 32, 8>}, {pipeline_mode = #tpu.pipeline_mode<synchronous>, transform_indices = @transform_2, window_bounds = array<i64: 1, 8>}, {transform_indices = @transform_3, window_bounds = array<i64: 8, 8>}]} {
    %c0 = arith.constant 0 : index
    %c0_0 = arith.constant 0 : index
    %0 = vector.load %arg1[%c0, %c0_0] : memref<8x32xf32, #tpu.memory_space<vmem>>, vector<8x32xf32>
    %c0_1 = arith.constant 0 : index
    %c0_2 = arith.constant 0 : index
    %1 = vector.load %arg2[%c0_1, %c0_2] : memref<32x8xf32, #tpu.memory_space<vmem>>, vector<32x8xf32>
    %cst = arith.constant dense<0.000000e+00> : vector<8x8xf32>
    %2 = tpu.matmul %0, %1, %cst {dimension_numbers = #tpu.dot_dimension_numbers<[1], [0], [0], [1], [0, 0, 1, 1], [], []>} : vector<8x32xf32>, vector<32x8xf32>, vector<8x8xf32> -> vector<8x8xf32>
    %c0_3 = arith.constant 0 : index
    %c0_4 = arith.constant 0 : index
    %3 = vector.load %arg3[%c0_3, %c0_4] : memref<1x8xf32, #tpu.memory_space<vmem>>, vector<1x8xf32>
    %4 = vector.broadcast %3 : vector<1x8xf32> to vector<8x8xf32>
    %5 = arith.addf %2, %4 : vector<8x8xf32>
    %c0_5 = arith.constant 0 : index
    %c0_6 = arith.constant 0 : index
    %6 = vector.load %arg4[%c0_5, %c0_6] : memref<8x8xf32, #tpu.memory_space<vmem>>, vector<8x8xf32>
    tpu.vector_store %arg4[%c0_5, %c0_6], %5 {strides = array<i32>} : memref<8x8xf32, #tpu.memory_space<vmem>>, vector<8x8xf32>,
    return
  }
  func.func @transform_0(%arg0: i32) -> (i32, i32) {
    %c0_i32 = arith.constant 0 : i32
    %c0_i32_0 = arith.constant 0 : i32
    return %arg0, %c0_i32 : i32, i32
  }
  func.func @transform_1(%arg0: i32) -> (i32, i32) {
    %c0_i32 = arith.constant 0 : i32
    %c0_i32_0 = arith.constant 0 : i32
    %c0_i32_1 = arith.constant 0 : i32
    return %c0_i32, %c0_i32_0 : i32, i32
  }
  func.func @transform_2(%arg0: i32) -> (i32, i32) {
    %c0_i32 = arith.constant 0 : i32
    %c0_i32_0 = arith.constant 0 : i32
    %c0_i32_1 = arith.constant 0 : i32
    return %c0_i32, %c0_i32_0 : i32, i32
  }
  func.func @transform_3(%arg0: i32) -> (i32, i32) {
    %c0_i32 = arith.constant 0 : i32
    %c0_i32_0 = arith.constant 0 : i32
    return %arg0, %c0_i32 : i32, i32
  }
}

</mosaic_0001>

<bundles_post_ra>
// kernel: _sepalate_fc_impl.1
= control target key start
LH: loop header
LB: loop body
LE: loop exit
PB: predicated region body
PF: predicated region fallthrough
CT: control target
= control target key end

     0   :  { %v160_v1 = vmov 0.0   ;;  %vm161_vm0 = vmmov 0   ;;  %s204_s0 = inlined_call_operand.vmem [shape: f32[8,32], index: 0, kind: input, shape index: {}]   ;;  %s205_s1 = inlined_call_operand.vmem [shape: f32[32,8], index: 1, kind: input, shape index: {}]   ;;  %s206_s2 = inlined_call_operand.vmem [shape: f32[1,8], index: 2, kind: input, shape index: {}]   ;;  %s207_s3 = inlined_call_operand.hbm [shape: f32[8,8], index: 3, kind: output, shape index: {}]  }
   0x1   :  { %v19_v0 = vld [vmem:[%s205_s1 + $0x18] sm:$0xff]  ;;  %124 = vmatprep.subr.mxu0 %v160_v1  ;;  %v18_v2 = vld [vmem:[%s205_s1 + $0x10] sm:$0xff]  ;;  %132 = vmatprep.mubr.msk.f32.mxu0 %vm161_vm0, %v160_v1 }
   0x2   :  { %125 = vmatpush3.msra.mxu0 %v19_v0 }
   0x3   :  { %8 = vsyncpa [#allocation3], 0  ;;  %126 = vmatprep.subr.mxu0 %v160_v1  ;;  %v17_v3 = vld [vmem:[%s205_s1 + $0x8] sm:$0xff]  ;;  %v16_v4 = vld [vmem:[%s205_s1] sm:$0xff]  ;;  %vm27_vm1 = vcmask 261120   ;;  %s162_s24 = smov [#allocation2]  }
   0x4   :  { %127 = vmatpush3.msra.mxu0 %v18_v2  ;;  %v15_v5 = vld [vmem:[%s204_s0] sm:$0xff]  ;;  %s109_s25 = sshll.u32 %s162_s24, 4  ;;  %vm101_vm2 = vcmask 64512   ;;  %s110_s25 = int_to_ptr.vmem [resolvable:$true] %s109_s25 }
   0x5   :  { %128 = vmatprep.subr.mxu0 %v160_v1  ;;  %v117_v6 = vld [vmem:[%s206_s2] ss:$0 sm:$0xff]  ;;  %s138_s1 = scalar_lea.vmem %s110_s25, 128  ;;  %p143_p1 = scmp.lt.s32.totalorder %s110_s25, %s110_s25 }
   0x6   :  { %129 = vmatpush3.msra.mxu0 %v17_v3  ;;  %p139_p0 = scmp.ne.s32.totalorder %s110_s25, %s138_s1  ;;  %p144_p2 = scmp.lt.s32.totalorder %s138_s1, %s138_s1 }
   0x7   :  { %130 = vmatprep.subr.mxu0 %v160_v1 }
   0x8   :  { %131 = vmatpush3.msra.mxu0 %v16_v4  ;;  %p145_p3 = por %p144_p2, %p143_p1 }
   0x9   :  { %133 = vmatmul.mubr.msk.f32.vlgmr.msra.gmra.mxu0 %vm27_vm1, %v15_v5 }
   0xa   :  { %p146_p4 = pnand %p145_p3, %p139_p0 }
  0xc9   :  { %v97_v7 = vpop.f32.mrf.mxu0 }
  0xca   :  { %v98_v8 = vadd.f32 %v117_v6, %v97_v7 }
  0xcb   :  { %v134_v9 = vpop.f32.mrf.mxu0 }
  0xcc   :  { %102 = vst.msk [vmem:[#allocation2] sm:$0xff] %vm101_vm2, %v98_v8 }
  0xcd   :  { %149 = shalt.err (!%p146_p4)
}
  0xce   :  { %112 = dma.vmem_to_hbm [thread:$0]  %s110_s25, 128, %s207_s3, [#allocation3]  }
  0xcf   :  { %158 = dma.done.wait [#allocation3], 128  }
  0xd0   :  { %159 = vsyncadd [#allocation3], 4294967168 }
  0xd1   :  { %116 = vsyncpa [#allocation3], 1 }

</bundles_post_ra>
